<compile_context>
chip_gen: v7x
topology: tpu7x:2x2x1
jax: 0.10.0
libtpu: 0.0.40
codegen_flags: <defaults>
</compile_context>

<pallas_src>
import jax
import jax.numpy as jnp
from jax import lax
from jax.experimental import pallas as pl
from jax.experimental.pallas import tpu as pltpu

IN_DIM = 2      # input features of the original module
HID = 50        # hidden width of the original module
OUT_DIM = 1     # output features of the original module
PAD = 128       # lane-aligned padded feature width


def _round_up(n, m):
    return (n + m - 1) // m * m


def mlp_kernel(x_ref,
               w1_ref, b1_ref,
               w2_ref, b2_ref,
               w3_ref, b3_ref,
               w4_ref, b4_ref,
               o_ref):
    # ---- Layer 1: 2 -> 50 (padded to 128). K=2 is degenerate for the MXU, so do it
    # as two VPU broadcast-FMAs (b1 fused into the second FMA).
    x = x_ref[...]                                                   # (tb, 2) f32
    h = x[:, 0:1] * w1_ref[0:1, :] + (x[:, 1:2] * w1_ref[1:2, :] + b1_ref[...])
    h = jnp.maximum(h, 0.0)                                          # (tb, 128) f32

    # ---- Layers 2 and 3: 50 -> 50 (padded to 128x128).
    # bf16 operands, f32 accumulation on the MXU; bias-add / ReLU in f32 on the VPU.
    h = jnp.dot(h.astype(jnp.bfloat16), w2_ref[...],
                preferred_element_type=jnp.float32) + b2_ref[...]
    h = jnp.maximum(h, 0.0)
    h = jnp.dot(h.astype(jnp.bfloat16), w3_ref[...],
                preferred_element_type=jnp.float32) + b3_ref[...]
    h = jnp.maximum(h, 0.0)                                          # (tb, 128) f32

    # ---- Layer 4: 50 -> 1, folded into lanes.  Contract the (1, 128) w4 row against
    # h's feature dim (NT form), producing a (1, tb) row that is lane-dense in the
    # batch index; store 128-wide chunks into the (tb//128, 128) output tile.
    row = lax.dot_general(w4_ref[...], h, (((1,), (1,)), ((), ())),
                          preferred_element_type=jnp.float32)        # (1, tb) f32
    rows = o_ref.shape[0]                                            # tb // 128 (static)
    for r in range(rows):                                            # unrolled at trace time
        o_ref[r:r + 1, :] = (row[:, r * 128:(r + 1) * 128]
                             + b4_ref[...]).astype(o_ref.dtype)


def prepare_params(params):
    """Pad / pre-layout parameters once on the host.

    Layer-1 weight -> (2, 128) f32; layers 2/3 -> (128, 128) bf16 (MXU operands);
    layer-4 weight -> a (1, 128) f32 row; biases 1-3 -> (1, 128) f32 rows; bias 4 is
    broadcast to a (1, 128) f32 row.  Zero padding preserves the math exactly: padded
    hidden lanes stay identically zero through every ReLU layer.
    """
    (w1, b1), (w2, b2), (w3, b3), (w4, b4) = params

    def pad_w(w, rows, cols):
        w = jnp.asarray(w, jnp.float32)
        return jnp.pad(w, ((0, rows - w.shape[0]), (0, cols - w.shape[1])))

    def pad_b(b, cols):
        b = jnp.asarray(b, jnp.float32).reshape(1, -1)
        return jnp.pad(b, ((0, 0), (0, cols - b.shape[1])))

    w4_row = jnp.asarray(w4, jnp.float32).reshape(1, -1)             # (1, 50)
    w4_row = jnp.pad(w4_row, ((0, 0), (0, PAD - w4_row.shape[1])))   # (1, 128)
    b4_row = jnp.full((1, PAD), jnp.asarray(b4, jnp.float32).reshape(())[()],
                      dtype=jnp.float32)

    return (pad_w(w1, IN_DIM, PAD),                 b1 := pad_b(b1, PAD),
            pad_w(w2, PAD, PAD).astype(jnp.bfloat16), pad_b(b2, PAD),
            pad_w(w3, PAD, PAD).astype(jnp.bfloat16), pad_b(b3, PAD),
            w4_row,                                   b4_row)


def feedforward_nn(x, padded_params, *, block_batch=None):
    batch = x.shape[0]

    # Tile policy: one whole-batch step for batch <= 1024 (per-step overhead dominates
    # tiny tiles), else 2048-row tiles (sweep 2048-4096 if tuning).  The folded output
    # block is (tb//128, 128), so tb must be a multiple of 128, and a multiple of 1024
    # whenever the grid has more than one step (sublane dim of the block % 8 == 0).
    if block_batch is None:
        tb = _round_up(batch, 128) if batch <= 1024 else 2048
    else:
        tb = max(128, _round_up(block_batch, 128))
    padded_batch = _round_up(batch, tb)
    if padded_batch != tb and (tb // 128) % 8 != 0:
        tb = _round_up(tb, 1024)
        padded_batch = _round_up(batch, tb)

    x = jnp.asarray(x, jnp.float32)
    if padded_batch != batch:
        x = jnp.pad(x, ((0, padded_batch - batch), (0, 0)))

    w1, b1, w2, b2, w3, b3, w4, b4 = padded_params

    def resident(arr):  # full-array block, constant index_map -> stays in VMEM
        return pl.BlockSpec(arr.shape, lambda i: (0, 0))

    out2d = pl.pallas_call(
        mlp_kernel,
        out_shape=jax.ShapeDtypeStruct((padded_batch // 128, PAD), jnp.float32),
        grid=(padded_batch // tb,),
        in_specs=[
            pl.BlockSpec((tb, IN_DIM), lambda i: (i, 0)),
            resident(w1), resident(b1),
            resident(w2), resident(b2),
            resident(w3), resident(b3),
            resident(w4), resident(b4),
        ],
        out_specs=pl.BlockSpec((tb // 128, PAD), lambda i: (i, 0)),
        compiler_params=pltpu.CompilerParams(
            dimension_semantics=("parallel",)),
    )(x, w1, b1, w2, b2, w3, b3, w4, b4)

    # Row-major unfold of the lane-packed output, drop batch padding, restore (batch, 1).
    return out2d.reshape(padded_batch)[:batch].reshape(batch, OUT_DIM)


def init_params(key):
    """Deterministic synthetic parameters matching the PyTorch module shapes.

    PyTorch: il.weight (50,2), hl1/hl2.weight (50,50), ol.weight (1,50).
    Stored here transposed as (in, out); biases as (out,).
    """
    dims = [(IN_DIM, HID), (HID, HID), (HID, HID), (HID, OUT_DIM)]
    params = []
    for i, (din, dout) in enumerate(dims):
        kw, kb = jax.random.split(jax.random.fold_in(key, i))
        bound = 1.0 / jnp.sqrt(din)  # PyTorch default Linear init scale
        w = jax.random.uniform(kw, (din, dout), jnp.float32, -bound, bound)
        b = jax.random.uniform(kb, (dout,), jnp.float32, -bound, bound)
        params.append((w, b))
    return params


def reference_forward(x, params):
    h = x
    for i, (w, b) in enumerate(params):
        h = h @ w + b
        if i < len(params) - 1:
            h = jnp.maximum(h, 0.0)
    return h


if __name__ == "__main__":
    key = jax.random.PRNGKey(0)
    k_x, k_x2, k_p = jax.random.split(key, 3)

    params = init_params(k_p)
    padded_params = prepare_params(params)

    # bf16 matmul operands (layers 2/3) vs the pure-f32 reference -> loosened tolerance.
    TOL = 5e-2

    # Small batch: single grid step (tb = 128).
    batch = 8
    x = jax.random.normal(k_x, (batch, IN_DIM), jnp.float32)
    out = jax.block_until_ready(feedforward_nn(x, padded_params))
    ref = reference_forward(x, params)
    assert out.shape == (batch, OUT_DIM)
    assert jnp.allclose(out, ref, atol=TOL, rtol=TOL)

    # Larger, non-multiple batch: exercises the grid (tb = 2048, 2 steps), batch
    # padding, and the lane-folded output reshape.
    batch2 = 2500
    x2 = jax.random.normal(k_x2, (batch2, IN_DIM), jnp.float32)
    out2 = jax.block_until_ready(feedforward_nn(x2, padded_params))
    ref2 = reference_forward(x2, params)
    assert out2.shape == (batch2, OUT_DIM)
    assert jnp.allclose(out2, ref2, atol=TOL, rtol=TOL)

    print("KERNEL_OK")
</pallas_src>

<mosaic_0001>
module attributes {stable_mosaic.version = 11 : i64} {
  func.func @mlp_kernel(%arg0: i32, %arg1: memref<128x2xf32, #tpu.memory_space<vmem>>, %arg2: memref<2x128xf32, #tpu.memory_space<vmem>>, %arg3: memref<1x128xf32, #tpu.memory_space<vmem>>, %arg4: memref<128x128xbf16, #tpu.memory_space<vmem>>, %arg5: memref<1x128xf32, #tpu.memory_space<vmem>>, %arg6: memref<128x128xbf16, #tpu.memory_space<vmem>>, %arg7: memref<1x128xf32, #tpu.memory_space<vmem>>, %arg8: memref<1x128xf32, #tpu.memory_space<vmem>>, %arg9: memref<1x128xf32, #tpu.memory_space<vmem>>, %arg10: memref<1x128xf32, #tpu.memory_space<vmem>>) attributes {dimension_semantics = [#tpu.dimension_semantics<parallel>], iteration_bounds = array<i64: 1>, scalar_prefetch = 0 : i64, scratch_operands = 0 : i64, tpu.core_type = #tpu.core_type<tc>, window_params = [{transform_indices = @transform_0, window_bounds = array<i64: 128, 2>}, {pipeline_mode = #tpu.pipeline_mode<synchronous>, transform_indices = @transform_1, window_bounds = array<i64: 2, 128>}, {pipeline_mode = #tpu.pipeline_mode<synchronous>, transform_indices = @transform_2, window_bounds = array<i64: 1, 128>}, {pipeline_mode = #tpu.pipeline_mode<synchronous>, transform_indices = @transform_3, window_bounds = array<i64: 128, 128>}, {pipeline_mode = #tpu.pipeline_mode<synchronous>, transform_indices = @transform_4, window_bounds = array<i64: 1, 128>}, {pipeline_mode = #tpu.pipeline_mode<synchronous>, transform_indices = @transform_5, window_bounds = array<i64: 128, 128>}, {pipeline_mode = #tpu.pipeline_mode<synchronous>, transform_indices = @transform_6, window_bounds = array<i64: 1, 128>}, {pipeline_mode = #tpu.pipeline_mode<synchronous>, transform_indices = @transform_7, window_bounds = array<i64: 1, 128>}, {pipeline_mode = #tpu.pipeline_mode<synchronous>, transform_indices = @transform_8, window_bounds = array<i64: 1, 128>}, {transform_indices = @transform_9, window_bounds = array<i64: 1, 128>}]} {
    %c0 = arith.constant 0 : index
    %c0_0 = arith.constant 0 : index
    %0 = vector.load %arg1[%c0, %c0_0] : memref<128x2xf32, #tpu.memory_space<vmem>>, vector<128x2xf32>
    %1 = vector.extract_strided_slice %0 {offsets = [0, 0], sizes = [128, 1], strides = [1, 1]} : vector<128x2xf32> to vector<128x1xf32>
    %c0_1 = arith.constant 0 : index
    %c0_2 = arith.constant 0 : index
    %2 = vector.load %arg2[%c0_1, %c0_2] : memref<2x128xf32, #tpu.memory_space<vmem>>, vector<1x128xf32>
    %3 = vector.broadcast %1 : vector<128x1xf32> to vector<128x128xf32>
    %4 = vector.broadcast %2 : vector<1x128xf32> to vector<128x128xf32>
    %5 = arith.mulf %3, %4 : vector<128x128xf32>
    %6 = vector.extract_strided_slice %0 {offsets = [0, 1], sizes = [128, 1], strides = [1, 1]} : vector<128x2xf32> to vector<128x1xf32>
    %c1 = arith.constant 1 : index
    %c0_3 = arith.constant 0 : index
    %7 = vector.load %arg2[%c1, %c0_3] : memref<2x128xf32, #tpu.memory_space<vmem>>, vector<1x128xf32>
    %8 = vector.broadcast %6 : vector<128x1xf32> to vector<128x128xf32>
    %9 = vector.broadcast %7 : vector<1x128xf32> to vector<128x128xf32>
    %10 = arith.mulf %8, %9 : vector<128x128xf32>
    %c0_4 = arith.constant 0 : index
    %c0_5 = arith.constant 0 : index
    %11 = vector.load %arg3[%c0_4, %c0_5] : memref<1x128xf32, #tpu.memory_space<vmem>>, vector<1x128xf32>
    %12 = vector.broadcast %11 : vector<1x128xf32> to vector<128x128xf32>
    %13 = arith.addf %10, %12 : vector<128x128xf32>
    %14 = arith.addf %5, %13 : vector<128x128xf32>
    %cst = arith.constant 0.000000e+00 : f32
    %15 = vector.broadcast %cst : f32 to vector<128x128xf32>
    %16 = arith.maximumf %14, %15 : vector<128x128xf32>
    %17 = arith.truncf %16 : vector<128x128xf32> to vector<128x128xbf16>
    %c0_6 = arith.constant 0 : index
    %c0_7 = arith.constant 0 : index
    %18 = vector.load %arg4[%c0_6, %c0_7] : memref<128x128xbf16, #tpu.memory_space<vmem>>, vector<128x128xbf16>
    %cst_8 = arith.constant dense<0.000000e+00> : vector<128x128xf32>
    %19 = tpu.matmul %17, %18, %cst_8 {dimension_numbers = #tpu.dot_dimension_numbers<[1], [0], [0], [1], [0, 0, 1, 1], [], []>} : vector<128x128xbf16>, vector<128x128xbf16>, vector<128x128xf32> -> vector<128x128xf32>
    %c0_9 = arith.constant 0 : index
    %c0_10 = arith.constant 0 : index
    %20 = vector.load %arg5[%c0_9, %c0_10] : memref<1x128xf32, #tpu.memory_space<vmem>>, vector<1x128xf32>
    %21 = vector.broadcast %20 : vector<1x128xf32> to vector<128x128xf32>
    %22 = arith.addf %19, %21 : vector<128x128xf32>
    %cst_11 = arith.constant 0.000000e+00 : f32
    %23 = vector.broadcast %cst_11 : f32 to vector<128x128xf32>
    %24 = arith.maximumf %22, %23 : vector<128x128xf32>
    %25 = arith.truncf %24 : vector<128x128xf32> to vector<128x128xbf16>
    %c0_12 = arith.constant 0 : index
    %c0_13 = arith.constant 0 : index
    %26 = vector.load %arg6[%c0_12, %c0_13] : memref<128x128xbf16, #tpu.memory_space<vmem>>, vector<128x128xbf16>
    %cst_14 = arith.constant dense<0.000000e+00> : vector<128x128xf32>
    %27 = tpu.matmul %25, %26, %cst_14 {dimension_numbers = #tpu.dot_dimension_numbers<[1], [0], [0], [1], [0, 0, 1, 1], [], []>} : vector<128x128xbf16>, vector<128x128xbf16>, vector<128x128xf32> -> vector<128x128xf32>
    %c0_15 = arith.constant 0 : index
    %c0_16 = arith.constant 0 : index
    %28 = vector.load %arg7[%c0_15, %c0_16] : memref<1x128xf32, #tpu.memory_space<vmem>>, vector<1x128xf32>
    %29 = vector.broadcast %28 : vector<1x128xf32> to vector<128x128xf32>
    %30 = arith.addf %27, %29 : vector<128x128xf32>
    %cst_17 = arith.constant 0.000000e+00 : f32
    %31 = vector.broadcast %cst_17 : f32 to vector<128x128xf32>
    %32 = arith.maximumf %30, %31 : vector<128x128xf32>
    %c0_18 = arith.constant 0 : index
    %c0_19 = arith.constant 0 : index
    %33 = vector.load %arg8[%c0_18, %c0_19] : memref<1x128xf32, #tpu.memory_space<vmem>>, vector<1x128xf32>
    %cst_20 = arith.constant dense<0.000000e+00> : vector<1x128xf32>
    %34 = tpu.matmul %33, %32, %cst_20 {dimension_numbers = #tpu.dot_dimension_numbers<[1], [1], [0], [0], [0, 0, 1, 0], [], []>} : vector<1x128xf32>, vector<128x128xf32>, vector<1x128xf32> -> vector<1x128xf32>
    %c0_21 = arith.constant 0 : index
    %c0_22 = arith.constant 0 : index
    %35 = vector.load %arg9[%c0_21, %c0_22] : memref<1x128xf32, #tpu.memory_space<vmem>>, vector<1x128xf32>
    %36 = arith.addf %34, %35 : vector<1x128xf32>
    %c0_23 = arith.constant 0 : index
    %c0_24 = arith.constant 0 : index
    %37 = vector.load %arg10[%c0_23, %c0_24] : memref<1x128xf32, #tpu.memory_space<vmem>>, vector<1x128xf32>
    tpu.vector_store %arg10[%c0_23, %c0_24], %36 {strides = array<i32>} : memref<1x128xf32, #tpu.memory_space<vmem>>, vector<1x128xf32>,
    return
  }
  func.func @transform_0(%arg0: i32) -> (i32, i32) {
    %c0_i32 = arith.constant 0 : i32
    %c0_i32_0 = arith.constant 0 : i32
    return %arg0, %c0_i32 : i32, i32
  }
  func.func @transform_1(%arg0: i32) -> (i32, i32) {
    %c0_i32 = arith.constant 0 : i32
    %c0_i32_0 = arith.constant 0 : i32
    %c0_i32_1 = arith.constant 0 : i32
    return %c0_i32, %c0_i32_0 : i32, i32
  }
  func.func @transform_2(%arg0: i32) -> (i32, i32) {
    %c0_i32 = arith.constant 0 : i32
    %c0_i32_0 = arith.constant 0 : i32
    %c0_i32_1 = arith.constant 0 : i32
    return %c0_i32, %c0_i32_0 : i32, i32
  }
  func.func @transform_3(%arg0: i32) -> (i32, i32) {
    %c0_i32 = arith.constant 0 : i32
    %c0_i32_0 = arith.constant 0 : i32
    %c0_i32_1 = arith.constant 0 : i32
    return %c0_i32, %c0_i32_0 : i32, i32
  }
  func.func @transform_4(%arg0: i32) -> (i32, i32) {
    %c0_i32 = arith.constant 0 : i32
    %c0_i32_0 = arith.constant 0 : i32
    %c0_i32_1 = arith.constant 0 : i32
    return %c0_i32, %c0_i32_0 : i32, i32
  }
  func.func @transform_5(%arg0: i32) -> (i32, i32) {
    %c0_i32 = arith.constant 0 : i32
    %c0_i32_0 = arith.constant 0 : i32
    %c0_i32_1 = arith.constant 0 : i32
    return %c0_i32, %c0_i32_0 : i32, i32
  }
  func.func @transform_6(%arg0: i32) -> (i32, i32) {
    %c0_i32 = arith.constant 0 : i32
    %c0_i32_0 = arith.constant 0 : i32
    %c0_i32_1 = arith.constant 0 : i32
    return %c0_i32, %c0_i32_0 : i32, i32
  }
  func.func @transform_7(%arg0: i32) -> (i32, i32) {
    %c0_i32 = arith.constant 0 : i32
    %c0_i32_0 = arith.constant 0 : i32
    %c0_i32_1 = arith.constant 0 : i32
    return %c0_i32, %c0_i32_0 : i32, i32
  }
  func.func @transform_8(%arg0: i32) -> (i32, i32) {
    %c0_i32 = arith.constant 0 : i32
    %c0_i32_0 = arith.constant 0 : i32
    %c0_i32_1 = arith.constant 0 : i32
    return %c0_i32, %c0_i32_0 : i32, i32
  }
  func.func @transform_9(%arg0: i32) -> (i32, i32) {
    %c0_i32 = arith.constant 0 : i32
    %c0_i32_0 = arith.constant 0 : i32
    return %arg0, %c0_i32 : i32, i32
  }
}

</mosaic_0001>

<bundles_post_ra>
// kernel: tpu_custom_call.1
= control target key start
LH: loop header
LB: loop body
LE: loop exit
PB: predicated region body
PF: predicated region fallthrough
CT: control target
= control target key end

     0   :  { %v1016_v2 = vmov 1   ;;  %v1017_v7 = vmov 0   ;;  %s1278_s0 = inlined_call_operand.vmem [shape: f32[128,2], index: 0, kind: input, shape index: {}]   ;;  %s1279_s1 = inlined_call_operand.vmem [shape: f32[2,128], index: 1, kind: input, shape index: {}]   ;;  %s1280_s2 = inlined_call_operand.vmem [shape: f32[1,128], index: 2, kind: input, shape index: {}]   ;;  %s1281_s3 = inlined_call_operand.vmem [shape: bf16[128,128], index: 3, kind: input, shape index: {}]   ;;  %s1282_s4 = inlined_call_operand.vmem [shape: f32[1,128], index: 4, kind: input, shape index: {}]   ;;  %s1283_s5 = inlined_call_operand.vmem [shape: bf16[128,128], index: 5, kind: input, shape index: {}]   ;;  %s1284_s6 = inlined_call_operand.vmem [shape: f32[1,128], index: 6, kind: input, shape index: {}]   ;;  %s1285_s7 = inlined_call_operand.vmem [shape: f32[1,128], index: 7, kind: input, shape index: {}]   ;;  %s1286_s8 = inlined_call_operand.vmem [shape: f32[1,128], index: 8, kind: input, shape index: {}]   ;;  %s1287_s9 = inlined_call_operand.hbm [shape: f32[1,128], index: 9, kind: output, shape index: {}]  }
   0x1   :  { %v36_v0 = vld [vmem:[%s1278_s0 + $0x10] sm:$0xff]  ;;  %v34_v1 = vld [vmem:[%s1278_s0] sm:$0xff]  ;;  %962 = vset.pattern.permute.xlu1 %v1016_v2  ;;  %961 = vset.pattern.permute.xlu0 %v1016_v2  ;;  %v37_v3 = vld [vmem:[%s1278_s0 + $0x18] sm:$0xff] }
   0x2   :  { %161 = vperm.xlu1 %962, %v36_v0   ;;  %153 = vperm.xlu0 %961, %v34_v1   ;;  %v35_v4 = vld [vmem:[%s1278_s0 + $0x8] sm:$0xff]  ;;  %v976_v5 = vld [vmem:[%s1281_s3] sm:$0xff]   ;;  %v978_v8 = vld [vmem:[%s1281_s3 + $0x10] sm:$0xff]  }
   0x3   :  { %832 = vmatprep.subr.bf16.mxu1 %v976_v5  ;;  %v977_v6 = vld [vmem:[%s1281_s3 + $0x8] sm:$0xff]   ;;  %v979_v9 = vld [vmem:[%s1281_s3 + $0x18] sm:$0xff]   ;;  %v38_v10 = vld [vmem:[%s1278_s0 + $0x20] sm:$0xff] }
   0x4   :  { %833 = vmatpush3.bf16.msra.mxu1 %v976_v5  ;;  %v980_v11 = vld [vmem:[%s1281_s3 + $0x20] sm:$0xff]  }
   0x5   :  { %834 = vmatprep.subr.bf16.mxu1 %v977_v6 }
   0x6   :  { %165 = vperm.xlu1 %962, %v37_v3   ;;  %157 = vperm.xlu0 %961, %v35_v4  }
   0x8   :  { %835 = vmatpush3.bf16.msra.mxu1 %v977_v6 }
   0x9   :  { %836 = vmatprep.subr.bf16.mxu1 %v978_v8 }
   0xa   :  { %964 = vset.pattern.permute.xlu1 %v1017_v7  ;;  %963 = vset.pattern.permute.xlu0 %v1017_v7 }
   0xb   :  { %58 = vperm.xlu1 %964, %v35_v4   ;;  %53 = vperm.xlu0 %963, %v34_v1  }
   0xc   :  { %837 = vmatpush3.bf16.msra.mxu1 %v978_v8 }
   0xd   :  { %838 = vmatprep.subr.bf16.mxu1 %v979_v9 }
   0xf   :  { %63 = vperm.xlu1 %964, %v36_v0   ;;  %68 = vperm.xlu0 %963, %v37_v3  }
  0x13   :  { %965 = vset.pattern.permute.xlu1 %v1016_v2  ;;  %73 = vperm.xlu0 %963, %v38_v10  }
  0x14   :  { %14 = vsyncpa [#allocation3], 0  ;;  %169 = vperm.xlu1 %965, %v38_v10   ;;  %v41_v12 = vld [vmem:[%s1278_s0 + $0x38] sm:$0xff]  ;;  %v40_v13 = vld [vmem:[%s1278_s0 + $0x30] sm:$0xff]  ;;  %839 = vmatpush3.bf16.msra.mxu1 %v979_v9  ;;  %vm1019_vm0 = vmmov 0   ;;  %s1021_s16 = smov [#allocation2]  }
  0x15   :  { %840 = vmatprep.subr.bf16.mxu1 %v980_v11  ;;  %v981_v14 = vld [vmem:[%s1281_s3 + $0x28] sm:$0xff]   ;;  %v982_v16 = vld [vmem:[%s1281_s3 + $0x30] sm:$0xff]   ;;  %v983_v18 = vld [vmem:[%s1281_s3 + $0x38] sm:$0xff]   ;;  %s754_s17 = sshll.u32 %s1021_s16, 4  ;;  %s755_s17 = int_to_ptr.vmem [resolvable:$true] %s754_s17 }
  0x16   :  { %v39_v15 = vld [vmem:[%s1278_s0 + $0x28] sm:$0xff]  ;;  %v42_v19 = vld [vmem:[%s1278_s0 + $0x40] sm:$0xff]  ;;  %v45_v20 = vld [vmem:[%s1278_s0 + $0x58] sm:$0xff]  ;;  %s996_s18 = scalar_lea.vmem %s755_s17, 32  ;;  %p997_p1 = scmp.lt.s32.totalorder %s755_s17, %s755_s17 }
  0x17   :  { %88 = vperm.xlu0 %963, %v41_v12   ;;  %v43_v17 = vld [vmem:[%s1278_s0 + $0x48] sm:$0xff]  ;;  %v44_v21 = vld [vmem:[%s1278_s0 + $0x50] sm:$0xff]  ;;  %v46_v23 = vld [vmem:[%s1278_s0 + $0x60] sm:$0xff] }
  0x18   :  { %177 = vperm.xlu1 %965, %v40_v13   ;;  %841 = vmatpush3.bf16.msra.mxu1 %v980_v11  ;;  %v47_v22 = vld [vmem:[%s1278_s0 + $0x68] sm:$0xff]  ;;  %v49_v24 = vld [vmem:[%s1278_s0 + $0x78] sm:$0xff]  ;;  %v48_v25 = vld [vmem:[%s1278_s0 + $0x70] sm:$0xff]  ;;  %s992_s0 = scalar_lea.vmem %s755_s17, 16 }
  0x19   :  { %842 = vmatprep.subr.bf16.mxu1 %v981_v14  ;;  %v984_v26 = vld [vmem:[%s1283_s5] sm:$0xff]   ;;  %v985_v62 = vld [vmem:[%s1283_s5 + $0x8] sm:$0xff]   ;;  %v987_v9 = vld [vmem:[%s1283_s5 + $0x18] sm:$0xff]   ;;  %p993_p0 = scmp.ne.s32.totalorder %s755_s17, %s992_s0  ;;  %p998_p2 = scmp.lt.s32.totalorder %s996_s18, %s992_s0 }
  0x1a   :  { %v1165_v29 = vld [vmem:[%s1279_s1 + $0x1] ss:$0 sm:$0xff]  ;;  %v1172_v34 = vld [vmem:[%s1280_s2] ss:$0 sm:$0xff] }
  0x1b   :  { %967 = vset.pattern.permute.xlu0 %v1016_v2  ;;  %v1177_v35 = vld [vmem:[%s1279_s1] ss:$0 sm:$0xff]  ;;  %p999_p3 = por %p998_p2, %p997_p1 }
  0x1c   :  { %181 = vperm.xlu1 %965, %v41_v12   ;;  %173 = vperm.xlu0 %967, %v39_v15  }
  0x1d   :  { %843 = vmatpush3.bf16.msra.mxu1 %v981_v14  ;;  %p1000_p4 = pnand %p999_p3, %p993_p0 }
  0x1e   :  { %844 = vmatprep.subr.bf16.mxu1 %v982_v16 }
  0x20   :  { %966 = vset.pattern.permute.xlu1 %v1017_v7  ;;  %189 = vperm.xlu0 %967, %v43_v17  }
  0x21   :  { %78 = vperm.xlu1 %966, %v39_v15   ;;  %845 = vmatpush3.bf16.msra.mxu1 %v982_v16 }
  0x22   :  { %846 = vmatprep.subr.bf16.mxu1 %v983_v18 }
  0x24   :  { %969 = vset.pattern.permute.xlu0 %v1017_v7 }
  0x25   :  { %83 = vperm.xlu1 %966, %v40_v13   ;;  %93 = vperm.xlu0 %969, %v42_v19  }
  0x26   :  { %847 = vmatpush3.bf16.msra.mxu1 %v983_v18 }
  0x27   :  { %864 = vmatprep.subr.bf16.mxu1 %v984_v26 }
  0x29   :  { %968 = vset.pattern.permute.xlu1 %v1016_v2  ;;  %108 = vperm.xlu0 %969, %v45_v20  }
  0x2a   :  { %185 = vperm.xlu1 %968, %v42_v19  }
  0x2d   :  { %972 = vset.pattern.permute.xlu0 %v1016_v2 }
  0x2e   :  { %193 = vperm.xlu1 %968, %v44_v21   ;;  %205 = vperm.xlu0 %972, %v47_v22  }
  0x32   :  { %197 = vperm.xlu1 %968, %v45_v20   ;;  %973 = vset.pattern.permute.xlu0 %v1017_v7 }
  0x33   :  { %113 = vperm.xlu0 %973, %v46_v23  }
  0x36   :  { %970 = vset.pattern.permute.xlu1 %v1017_v7 }
  0x37   :  { %98 = vperm.xlu1 %970, %v43_v17   ;;  %128 = vperm.xlu0 %973, %v49_v24   ;;  %v988_v17 = vld [vmem:[%s1283_s5 + $0x20] sm:$0xff]  }
  0x3b   :  { %103 = vperm.xlu1 %970, %v44_v21   ;;  %975 = vset.pattern.permute.xlu0 %v1016_v2 }
  0x3f   :  { %971 = vset.pattern.permute.xlu1 %v1016_v2  ;;  %v986_v2 = vld [vmem:[%s1283_s5 + $0x10] sm:$0xff]  }
  0x40   :  { %201 = vperm.xlu1 %971, %v46_v23  }
  0x44   :  { %209 = vperm.xlu1 %971, %v48_v25  }
  0x48   :  { %213 = vperm.xlu1 %971, %v49_v24  }
  0x4c   :  { %974 = vset.pattern.permute.xlu1 %v1017_v7 }
  0x4d   :  { %118 = vperm.xlu1 %974, %v47_v22  }
  0x51   :  { %123 = vperm.xlu1 %974, %v48_v25   ;;  %v989_v25 = vld [vmem:[%s1283_s5 + $0x28] sm:$0xff]  }
  0x81   :  { %v162_v27 = vpop.permute.xlu1 %161  ;;  %v154_v28 = vpop.permute.xlu0 %153 }
  0x82   :  { %v220_v30 = vmul.f32 %v1165_v29, %v154_v28  ;;  %v222_v38 = vmul.f32 %v1165_v29, %v162_v27 }
  0x84   :  { %v243_v36 = vadd.f32 %v1172_v34, %v220_v30  ;;  %v245_v46 = vadd.f32 %v1172_v34, %v222_v38 }
  0x85   :  { %v166_v31 = vpop.permute.xlu1 %165  ;;  %v158_v32 = vpop.permute.xlu0 %157 }
  0x86   :  { %v221_v33 = vmul.f32 %v1165_v29, %v158_v32  ;;  %v223_v39 = vmul.f32 %v1165_v29, %v166_v31 }
  0x88   :  { %v244_v37 = vadd.f32 %v1172_v34, %v221_v33  ;;  %v246_v47 = vadd.f32 %v1172_v34, %v223_v39 }
  0x8a   :  { %v59_v40 = vpop.permute.xlu1 %58  ;;  %v54_v41 = vpop.permute.xlu0 %53 }
  0x8b   :  { %v136_v42 = vmul.f32 %v1177_v35, %v59_v40  ;;  %v135_v43 = vmul.f32 %v1177_v35, %v54_v41 }
  0x8d   :  { %v259_v44 = vadd.f32 %v243_v36, %v135_v43  ;;  %v260_v45 = vadd.f32 %v244_v37, %v136_v42 }
  0x8e   :  { %v64_v48 = vpop.permute.xlu1 %63  ;;  %v69_v49 = vpop.permute.xlu0 %68 }
  0x8f   :  { %v137_v50 = vmul.f32 %v1177_v35, %v64_v48  ;;  %v138_v51 = vmul.f32 %v1177_v35, %v69_v49  ;;  %v275_v52 = vmax.f32 %v259_v44, 0.0  ;;  %v276_v53 = vmax.f32 %v260_v45, 0.0 }
  0x91   :  { %v261_v54 = vadd.f32 %v245_v46, %v137_v50  ;;  %v262_v55 = vadd.f32 %v246_v47, %v138_v51  ;;  %v291_v56 = vpack.c.bf16 %v276_v53, %v275_v52 }
  0x92   :  { %v74_v57 = vpop.permute.xlu0 %73 }
  0x93   :  { %v277_v58 = vmax.f32 %v261_v54, 0.0  ;;  %v278_v59 = vmax.f32 %v262_v55, 0.0  ;;  %v170_v60 = vpop.permute.xlu1 %169  ;;  %848 = vmatprep.mubr.bf16.mxu1 %v291_v56  ;;  %v139_v6 = vmul.f32 %v1177_v35, %v74_v57 }
  0x94   :  { %v224_v1 = vmul.f32 %v1165_v29, %v170_v60 }
  0x95   :  { %v292_v61 = vpack.c.bf16 %v278_v59, %v277_v58 }
  0x96   :  { %v89_v63 = vpop.permute.xlu0 %88  ;;  %v247_v5 = vadd.f32 %v1172_v34, %v224_v1 }
  0x97   :  { %v178_v0 = vpop.permute.xlu1 %177  ;;  %849 = vmatmul.mubr.bf16.vlgmr.msra.gmra.mrb[0].mxu1 %v292_v61  ;;  %v142_v14 = vmul.f32 %v1177_v35, %v89_v63 }
  0x98   :  { %865 = vmatpush3.bf16.msra.mxu1 %v984_v26  ;;  %v263_v11 = vadd.f32 %v247_v5, %v139_v6  ;;  %v226_v13 = vmul.f32 %v1165_v29, %v178_v0 }
  0x99   :  { %866 = vmatprep.subr.bf16.mxu1 %v985_v62 }
  0x9a   :  { %v279_v19 = vmax.f32 %v263_v11, 0.0  ;;  %v249_v21 = vadd.f32 %v1172_v34, %v226_v13 }
  0x9b   :  { %v182_v3 = vpop.permute.xlu1 %181  ;;  %v174_v4 = vpop.permute.xlu0 %173 }
  0x9c   :  { %v225_v7 = vmul.f32 %v1165_v29, %v174_v4  ;;  %867 = vmatpush3.bf16.msra.mxu1 %v985_v62  ;;  %v227_v8 = vmul.f32 %v1165_v29, %v182_v3 }
  0x9d   :  { %868 = vmatprep.subr.bf16.mxu1 %v986_v2 }
  0x9e   :  { %v248_v10 = vadd.f32 %v1172_v34, %v225_v7  ;;  %v250_v15 = vadd.f32 %v1172_v34, %v227_v8 }
  0x9f   :  { %v190_v31 = vpop.permute.xlu0 %189 }
  0xa0   :  { %v79_v12 = vpop.permute.xlu1 %78  ;;  %869 = vmatpush3.bf16.msra.mxu1 %v986_v2  ;;  %v266_v22 = vadd.f32 %v250_v15, %v142_v14  ;;  %v229_v40 = vmul.f32 %v1165_v29, %v190_v31 }
  0xa1   :  { %v140_v16 = vmul.f32 %v1177_v35, %v79_v12  ;;  %870 = vmatprep.subr.bf16.mxu1 %v987_v9 }
  0xa2   :  { %v282_v28 = vmax.f32 %v266_v22, 0.0  ;;  %v252_v45 = vadd.f32 %v1172_v34, %v229_v40 }
  0xa3   :  { %v264_v18 = vadd.f32 %v248_v10, %v140_v16 }
  0xa4   :  { %v84_v20 = vpop.permute.xlu1 %83  ;;  %871 = vmatpush3.bf16.msra.mxu1 %v987_v9  ;;  %v94_v38 = vpop.permute.xlu0 %93 }
  0xa5   :  { %v280_v23 = vmax.f32 %v264_v18, 0.0  ;;  %v141_v24 = vmul.f32 %v1177_v35, %v84_v20  ;;  %872 = vmatprep.subr.bf16.mxu1 %v988_v17  ;;  %v143_v42 = vmul.f32 %v1177_v35, %v94_v38 }
  0xa7   :  { %v265_v26 = vadd.f32 %v249_v21, %v141_v24  ;;  %v293_v27 = vpack.c.bf16 %v280_v23, %v279_v19 }
  0xa8   :  { %873 = vmatpush3.bf16.msra.mxu1 %v988_v17  ;;  %v109_v44 = vpop.permute.xlu0 %108 }
  0xa9   :  { %v281_v30 = vmax.f32 %v265_v26, 0.0  ;;  %v186_v32 = vpop.permute.xlu1 %185  ;;  %852 = vmatprep.mubr.bf16.mxu1 %v293_v27  ;;  %874 = vmatprep.subr.bf16.mxu1 %v989_v25  ;;  %v146_v50 = vmul.f32 %v1177_v35, %v109_v44 }
  0xaa   :  { %v228_v37 = vmul.f32 %v1165_v29, %v186_v32 }
  0xab   :  { %v294_v33 = vpack.c.bf16 %v282_v28, %v281_v30  ;;  %v990_v30 = vld [vmem:[%s1283_s5 + $0x30] sm:$0xff]  }
  0xac   :  { %875 = vmatpush3.bf16.msra.mxu1 %v989_v25  ;;  %v251_v41 = vadd.f32 %v1172_v34, %v228_v37 }
  0xad   :  { %v194_v36 = vpop.permute.xlu1 %193  ;;  %853 = vmatmul.mubr.bf16.gmra.mrb[4].mxu1 %v294_v33  ;;  %v206_v63 = vpop.permute.xlu0 %205  ;;  %876 = vmatprep.subr.bf16.mxu1 %v990_v30 }
  0xae   :  { %v267_v46 = vadd.f32 %v251_v41, %v143_v42  ;;  %v230_v48 = vmul.f32 %v1165_v29, %v194_v36  ;;  %v233_v6 = vmul.f32 %v1165_v29, %v206_v63 }
  0xb0   :  { %v283_v53 = vmax.f32 %v267_v46, 0.0  ;;  %v253_v55 = vadd.f32 %v1172_v34, %v230_v48  ;;  %v256_v11 = vadd.f32 %v1172_v34, %v233_v6  ;;  %877 = vmatpush3.bf16.msra.mxu1 %v990_v30 }
  0xb1   :  { %v198_v39 = vpop.permute.xlu1 %197 }
  0xb2   :  { %v231_v43 = vmul.f32 %v1165_v29, %v198_v39  ;;  %v114_v4 = vpop.permute.xlu0 %113 }
  0xb3   :  { %v147_v8 = vmul.f32 %v1177_v35, %v114_v4 }
  0xb4   :  { %v254_v49 = vadd.f32 %v1172_v34, %v231_v43 }
  0xb6   :  { %v99_v47 = vpop.permute.xlu1 %98  ;;  %v270_v56 = vadd.f32 %v254_v49, %v146_v50  ;;  %v129_v10 = vpop.permute.xlu0 %128 }
  0xb7   :  { %v144_v51 = vmul.f32 %v1177_v35, %v99_v47  ;;  %v150_v16 = vmul.f32 %v1177_v35, %v129_v10 }
  0xb8   :  { %v286_v61 = vmax.f32 %v270_v56, 0.0 }
  0xb9   :  { %v268_v52 = vadd.f32 %v252_v45, %v144_v51 }
  0xba   :  { %v104_v54 = vpop.permute.xlu1 %103 }
  0xbb   :  { %v284_v57 = vmax.f32 %v268_v52, 0.0  ;;  %v145_v58 = vmul.f32 %v1177_v35, %v104_v54 }
  0xbd   :  { %v269_v59 = vadd.f32 %v253_v55, %v145_v58  ;;  %v295_v60 = vpack.c.bf16 %v284_v57, %v283_v53 }
  0xbf   :  { %v285_v62 = vmax.f32 %v269_v59, 0.0  ;;  %v202_v0 = vpop.permute.xlu1 %201  ;;  %856 = vmatprep.mubr.bf16.mxu1 %v295_v60 }
  0xc0   :  { %v232_v3 = vmul.f32 %v1165_v29, %v202_v0 }
  0xc1   :  { %v296_v1 = vpack.c.bf16 %v286_v61, %v285_v62 }
  0xc2   :  { %v255_v7 = vadd.f32 %v1172_v34, %v232_v3 }
  0xc3   :  { %v210_v2 = vpop.permute.xlu1 %209  ;;  %857 = vmatmul.mubr.bf16.gmra.mrb[8].mxu1 %v296_v1 }
  0xc4   :  { %v271_v12 = vadd.f32 %v255_v7, %v147_v8  ;;  %v234_v14 = vmul.f32 %v1165_v29, %v210_v2 }
  0xc6   :  { %v287_v19 = vmax.f32 %v271_v12, 0.0  ;;  %v257_v21 = vadd.f32 %v1172_v34, %v234_v14 }
  0xc7   :  { %v214_v5 = vpop.permute.xlu1 %213 }
  0xc8   :  { %v235_v9 = vmul.f32 %v1165_v29, %v214_v5 }
  0xca   :  { %v258_v15 = vadd.f32 %v1172_v34, %v235_v9  ;;  %v991_v34 = vld [vmem:[%s1283_s5 + $0x38] sm:$0xff]  }
  0xcb   :  { %878 = vmatprep.subr.bf16.mxu1 %v991_v34 }
  0xcc   :  { %v119_v13 = vpop.permute.xlu1 %118  ;;  %v274_v22 = vadd.f32 %v258_v15, %v150_v16  ;;  %879 = vmatpush3.bf16.msra.mxu1 %v991_v34 }
  0xcd   :  { %v148_v17 = vmul.f32 %v1177_v35, %v119_v13 }
  0xce   :  { %v290_v27 = vmax.f32 %v274_v22, 0.0 }
  0xcf   :  { %v272_v18 = vadd.f32 %v256_v11, %v148_v17 }
  0xd0   :  { %v124_v20 = vpop.permute.xlu1 %123 }
  0xd1   :  { %v288_v23 = vmax.f32 %v272_v18, 0.0  ;;  %v149_v24 = vmul.f32 %v1177_v35, %v124_v20  ;;  %v765_v35 = vld [vmem:[%s1282_s4] ss:$0 sm:$0xff] }
  0xd3   :  { %v273_v25 = vadd.f32 %v257_v21, %v149_v24  ;;  %v297_v26 = vpack.c.bf16 %v288_v23, %v287_v19 }
  0xd5   :  { %v289_v28 = vmax.f32 %v273_v25, 0.0  ;;  %860 = vmatprep.mubr.bf16.mxu1 %v297_v26  ;;  %v1018_v25 = vmov 0.0|0.0   ;;  %v1020_v26 = vmov 0.0  }
  0xd6   :  { %931 = vmatprep.subr.bf16.mxu0 %v1018_v25  ;;  %928 = vmatprep.mubr.msk.f32.mxu0 %vm1019_vm0, %v1020_v26 }
  0xd7   :  { %v298_v29 = vpack.c.bf16 %v290_v27, %v289_v28  ;;  %v774_v27 = vld [vmem:[%s1284_s6] ss:$0 sm:$0xff] }
  0xd9   :  { %861 = vmatmul.mubr.bf16.gmra.mrb[12].mxu1 %v298_v29 }
 0x16a   :  { %v850_v31 = vpop.f32.mrb[0].mxu1 }
 0x16b   :  { %v413_v32 = vadd.f32 %v850_v31, %v765_v35  ;;  %v404_v33 = vpop.f32.mrb[1].mxu1 }
 0x16c   :  { %v405_v36 = vadd.f32 %v765_v35, %v404_v33  ;;  %v851_v37 = vpop.f32.mrb[2].mxu1 }
 0x16d   :  { %v416_v38 = vadd.f32 %v851_v37, %v765_v35  ;;  %v407_v39 = vpop.f32.mrb[3].mxu1  ;;  %v469_v41 = vmax.f32 %v413_v32, 0.0 }
 0x16e   :  { %v408_v40 = vadd.f32 %v765_v35, %v407_v39  ;;  %v467_v43 = vmax.f32 %v405_v36, 0.0 }
 0x16f   :  { %v470_v42 = vmax.f32 %v416_v38, 0.0 }
 0x170   :  { %v468_v44 = vmax.f32 %v408_v40, 0.0 }
 0x171   :  { %v484_v45 = vpack.c.bf16 %v470_v42, %v469_v41 }
 0x172   :  { %v483_v46 = vpack.c.bf16 %v468_v44, %v467_v43 }
 0x174   :  { %880 = vmatprep.mubr.bf16.mxu1 %v483_v46 }
 0x175   :  { %881 = vmatmul.mubr.bf16.vlgmr.msra.gmra.mrb[16].mxu1 %v484_v45 }
 0x180   :  { %v854_v47 = vpop.f32.mrb[4].mxu1 }
 0x181   :  { %v429_v48 = vadd.f32 %v854_v47, %v765_v35  ;;  %v420_v49 = vpop.f32.mrb[5].mxu1 }
 0x182   :  { %v421_v50 = vadd.f32 %v765_v35, %v420_v49  ;;  %v855_v51 = vpop.f32.mrb[6].mxu1 }
 0x183   :  { %v432_v52 = vadd.f32 %v855_v51, %v765_v35  ;;  %v423_v53 = vpop.f32.mrb[7].mxu1  ;;  %v473_v55 = vmax.f32 %v429_v48, 0.0 }
 0x184   :  { %v424_v54 = vadd.f32 %v765_v35, %v423_v53  ;;  %v471_v57 = vmax.f32 %v421_v50, 0.0 }
 0x185   :  { %v474_v56 = vmax.f32 %v432_v52, 0.0 }
 0x186   :  { %v472_v58 = vmax.f32 %v424_v54, 0.0 }
 0x187   :  { %v486_v59 = vpack.c.bf16 %v474_v56, %v473_v55 }
 0x188   :  { %v485_v60 = vpack.c.bf16 %v472_v58, %v471_v57 }
 0x18a   :  { %884 = vmatprep.mubr.bf16.mxu1 %v485_v60 }
 0x18b   :  { %885 = vmatmul.mubr.bf16.gmra.mrb[20].mxu1 %v486_v59 }
 0x196   :  { %v858_v61 = vpop.f32.mrb[8].mxu1 }
 0x197   :  { %v445_v62 = vadd.f32 %v858_v61, %v765_v35  ;;  %v436_v63 = vpop.f32.mrb[9].mxu1 }
 0x198   :  { %v437_v0 = vadd.f32 %v765_v35, %v436_v63  ;;  %v859_v1 = vpop.f32.mrb[10].mxu1 }
 0x199   :  { %v448_v2 = vadd.f32 %v859_v1, %v765_v35  ;;  %v439_v3 = vpop.f32.mrb[11].mxu1  ;;  %v477_v5 = vmax.f32 %v445_v62, 0.0 }
 0x19a   :  { %v440_v4 = vadd.f32 %v765_v35, %v439_v3  ;;  %v475_v7 = vmax.f32 %v437_v0, 0.0 }
 0x19b   :  { %v478_v6 = vmax.f32 %v448_v2, 0.0 }
 0x19c   :  { %v476_v8 = vmax.f32 %v440_v4, 0.0 }
 0x19d   :  { %v488_v9 = vpack.c.bf16 %v478_v6, %v477_v5 }
 0x19e   :  { %v487_v10 = vpack.c.bf16 %v476_v8, %v475_v7 }
 0x1a0   :  { %888 = vmatprep.mubr.bf16.mxu1 %v487_v10 }
 0x1a1   :  { %889 = vmatmul.mubr.bf16.gmra.mrb[24].mxu1 %v488_v9 }
 0x1ac   :  { %v862_v11 = vpop.f32.mrb[12].mxu1 }
 0x1ad   :  { %v461_v12 = vadd.f32 %v862_v11, %v765_v35  ;;  %v452_v13 = vpop.f32.mrb[13].mxu1 }
 0x1ae   :  { %v453_v14 = vadd.f32 %v765_v35, %v452_v13  ;;  %v863_v15 = vpop.f32.mrb[14].mxu1 }
 0x1af   :  { %v464_v16 = vadd.f32 %v863_v15, %v765_v35  ;;  %v455_v17 = vpop.f32.mrb[15].mxu1  ;;  %v481_v19 = vmax.f32 %v461_v12, 0.0 }
 0x1b0   :  { %v456_v18 = vadd.f32 %v765_v35, %v455_v17  ;;  %v479_v21 = vmax.f32 %v453_v14, 0.0 }
 0x1b1   :  { %v482_v20 = vmax.f32 %v464_v16, 0.0 }
 0x1b2   :  { %v480_v22 = vmax.f32 %v456_v18, 0.0 }
 0x1b3   :  { %v490_v23 = vpack.c.bf16 %v482_v20, %v481_v19  ;;  %v675_v20 = vld [vmem:[%s1285_s7] sm:$0x1] }
 0x1b4   :  { %v489_v24 = vpack.c.bf16 %v480_v22, %v479_v21  ;;  %v676_v21 = vld [vmem:[%s1286_s8] sm:$0x1] }
 0x1b6   :  { %892 = vmatprep.mubr.bf16.mxu1 %v489_v24 }
 0x1b7   :  { %893 = vmatmul.mubr.bf16.gmra.mrb[28].mxu1 %v490_v23 }
 0x248   :  { %v882_v28 = vpop.f32.mrb[16].mxu1 }
 0x249   :  { %v605_v29 = vadd.f32 %v882_v28, %v774_v27  ;;  %v596_v30 = vpop.f32.mrb[17].mxu1 }
 0x24a   :  { %v597_v34 = vadd.f32 %v774_v27, %v596_v30  ;;  %v883_v35 = vpop.f32.mrb[18].mxu1 }
 0x24b   :  { %v608_v31 = vadd.f32 %v883_v35, %v774_v27  ;;  %v599_v32 = vpop.f32.mrb[19].mxu1  ;;  %v661_v36 = vmax.f32 %v605_v29, 0.0 }
 0x24c   :  { %v600_v33 = vadd.f32 %v774_v27, %v599_v32  ;;  %v659_v38 = vmax.f32 %v597_v34, 0.0 }
 0x24d   :  { %v662_v37 = vmax.f32 %v608_v31, 0.0 }
 0x24e   :  { %v660_v39 = vmax.f32 %v600_v33, 0.0 }
 0x24f   :  { %v935_v40 = vpack.c.bf16 %v662_v37, %v661_v36 }
 0x250   :  { %v932_v41 = vpack.c.bf16 %v660_v39, %v659_v38 }
 0x252   :  { %933 = vmatpush3.bf16.xpose.msra.mxu0 %v932_v41 }
 0x253   :  { %934 = vmatprep.subr.bf16.mxu0 %v1018_v25 }
 0x25a   :  { %936 = vmatpush3.bf16.xpose.msra.mxu0 %v935_v40 }
 0x25b   :  { %937 = vmatprep.subr.bf16.mxu0 %v1018_v25 }
 0x25e   :  { %v886_v42 = vpop.f32.mrb[20].mxu1 }
 0x25f   :  { %v621_v43 = vadd.f32 %v886_v42, %v774_v27  ;;  %v612_v44 = vpop.f32.mrb[21].mxu1 }
 0x260   :  { %v613_v45 = vadd.f32 %v774_v27, %v612_v44  ;;  %v887_v46 = vpop.f32.mrb[22].mxu1 }
 0x261   :  { %v624_v47 = vadd.f32 %v887_v46, %v774_v27  ;;  %v615_v48 = vpop.f32.mrb[23].mxu1  ;;  %v665_v50 = vmax.f32 %v621_v43, 0.0 }
 0x262   :  { %v616_v49 = vadd.f32 %v774_v27, %v615_v48  ;;  %v663_v52 = vmax.f32 %v613_v45, 0.0 }
 0x263   :  { %v666_v51 = vmax.f32 %v624_v47, 0.0 }
 0x264   :  { %v664_v53 = vmax.f32 %v616_v49, 0.0 }
 0x265   :  { %v941_v54 = vpack.c.bf16 %v666_v51, %v665_v50 }
 0x266   :  { %v938_v55 = vpack.c.bf16 %v664_v53, %v663_v52 }
 0x268   :  { %939 = vmatpush3.bf16.xpose.msra.mxu0 %v938_v55 }
 0x269   :  { %940 = vmatprep.subr.bf16.mxu0 %v1018_v25 }
 0x270   :  { %942 = vmatpush3.bf16.xpose.msra.mxu0 %v941_v54 }
 0x271   :  { %943 = vmatprep.subr.bf16.mxu0 %v1018_v25 }
 0x274   :  { %v890_v56 = vpop.f32.mrb[24].mxu1 }
 0x275   :  { %v637_v57 = vadd.f32 %v890_v56, %v774_v27  ;;  %v628_v58 = vpop.f32.mrb[25].mxu1 }
 0x276   :  { %v629_v59 = vadd.f32 %v774_v27, %v628_v58  ;;  %v891_v60 = vpop.f32.mrb[26].mxu1 }
 0x277   :  { %v640_v61 = vadd.f32 %v891_v60, %v774_v27  ;;  %v631_v62 = vpop.f32.mrb[27].mxu1  ;;  %v669_v0 = vmax.f32 %v637_v57, 0.0 }
 0x278   :  { %v632_v63 = vadd.f32 %v774_v27, %v631_v62  ;;  %v667_v2 = vmax.f32 %v629_v59, 0.0 }
 0x279   :  { %v670_v1 = vmax.f32 %v640_v61, 0.0 }
 0x27a   :  { %v668_v3 = vmax.f32 %v632_v63, 0.0 }
 0x27b   :  { %v947_v4 = vpack.c.bf16 %v670_v1, %v669_v0 }
 0x27c   :  { %v944_v5 = vpack.c.bf16 %v668_v3, %v667_v2 }
 0x27e   :  { %945 = vmatpush3.bf16.xpose.msra.mxu0 %v944_v5 }
 0x27f   :  { %946 = vmatprep.subr.bf16.mxu0 %v1018_v25 }
 0x286   :  { %948 = vmatpush3.bf16.xpose.msra.mxu0 %v947_v4 }
 0x287   :  { %949 = vmatprep.subr.bf16.mxu0 %v1018_v25 }
 0x28a   :  { %v894_v6 = vpop.f32.mrb[28].mxu1 }
 0x28b   :  { %v653_v7 = vadd.f32 %v894_v6, %v774_v27  ;;  %v644_v8 = vpop.f32.mrb[29].mxu1 }
 0x28c   :  { %v645_v9 = vadd.f32 %v774_v27, %v644_v8  ;;  %v895_v10 = vpop.f32.mrb[30].mxu1 }
 0x28d   :  { %v656_v11 = vadd.f32 %v895_v10, %v774_v27  ;;  %v647_v12 = vpop.f32.mrb[31].mxu1  ;;  %v673_v14 = vmax.f32 %v653_v7, 0.0 }
 0x28e   :  { %v648_v13 = vadd.f32 %v774_v27, %v647_v12  ;;  %v671_v16 = vmax.f32 %v645_v9, 0.0 }
 0x28f   :  { %v674_v15 = vmax.f32 %v656_v11, 0.0 }
 0x290   :  { %v672_v17 = vmax.f32 %v648_v13, 0.0 }
 0x291   :  { %v953_v18 = vpack.c.bf16 %v674_v15, %v673_v14 }
 0x292   :  { %v950_v19 = vpack.c.bf16 %v672_v17, %v671_v16 }
 0x294   :  { %951 = vmatpush3.bf16.xpose.msra.mxu0 %v950_v19 }
 0x295   :  { %952 = vmatprep.subr.bf16.mxu0 %v1018_v25 }
 0x29c   :  { %954 = vmatpush3.bf16.xpose.msra.mxu0 %v953_v18 }
 0x2a3   :  { %929 = vmatmul.mubr.f32.vlgmr.msra.gmra.mrb[0].mxu0 %v675_v20 }
 0x376   :  { %v743_v22 = vpop.f32.mrb[0].mxu0 }
 0x377   :  { %v744_v23 = vadd.f32 %v743_v22, %v676_v21  ;;  %v930_v24 = vpop.f32.mrb[1].mxu0 }
 0x379   :  { %747 = vst [vmem:[#allocation2] sm:$0x1] %v744_v23 }
 0x37a   :  { %1003 = shalt.err (!%p1000_p4)
}
 0x37b   :  { %s1004_s20 = scalar_lea.hbm %s1287_s9, 16 }
 0x37c   :  { %p1005_p5 = scmp.ne.s32.totalorder %s1287_s9, %s1004_s20  ;;  %p1008_p6 = scmp.lt.u32.totalorder %s1004_s20, %s1287_s9 }
 0x37e   :  { %p1010_p7 = pnand %p1008_p6, %p1005_p5 }
 0x380   :  { %1013 = shalt.err (!%p1010_p7)
}
 0x381   :  { %757 = dma.vmem_to_hbm [thread:$0]  %s755_s17, 16, %s1287_s9, [#allocation3]  }
 0x382   :  { %1014 = dma.done.wait [#allocation3], 16  }
 0x383   :  { %1015 = vsyncadd [#allocation3], 4294967280 }
 0x384   :  { %761 = vsyncpa [#allocation3], 1 }

</bundles_post_ra>
